<compile_context>
chip_gen: v5e
topology: v5e:2x2
jax: 0.10.0
libtpu: 0.0.40
codegen_flags: <defaults>
</compile_context>

<pallas_src>
import math
import functools

import numpy as np
import jax
import jax.numpy as jnp
from jax import lax
from jax.experimental import pallas as pl
from jax.experimental.pallas import tpu as pltpu


# ----------------------------------------------------------------------------
# Gaussian blur as a matrix (torchvision GaussianBlur: separable 1-D gaussian,
# reflect padding).  Built host-side with numpy; kernel_size == 1 -> None
# (callers skip the blur entirely).
# ----------------------------------------------------------------------------
def gaussian_blur_matrix(seq_len: int, kernel_size: int, sigma: float):
    if kernel_size == 1:
        return None
    half = (kernel_size - 1) * 0.5
    x = np.linspace(-half, half, kernel_size)
    pdf = np.exp(-0.5 * (x / sigma) ** 2)
    k1d = (pdf / pdf.sum()).astype(np.float64)
    r = kernel_size // 2
    bm = np.zeros((seq_len, seq_len), np.float64)
    rows = np.arange(seq_len)
    for t in range(-r, r + 1):
        j = rows + t
        # 'reflect' padding (no edge repeat); iterate the reflection so indices
        # stay valid even when r >= seq_len.
        for _ in range(64):
            if np.all((j >= 0) & (j < seq_len)):
                break
            j = np.abs(j)
            j = np.where(j >= seq_len, 2 * seq_len - 2 - j, j)
        np.add.at(bm, (rows, j), k1d[t + r])
    return jnp.asarray(bm, dtype=jnp.float32)


# ----------------------------------------------------------------------------
# Pallas kernel: one grid step = `batch_block` batch elements, ALL heads fused.
#   q_ref, kv_ref : (bb, S, H)
#   wq/wk_ref     : (H, nH*H)   fused, lane-dense per-head weights
#   bq/bk_ref     : (1, nH*H)
#   blur_ref      : (S, S)      only when use_blur
#   out_ref       : (bb, nH, S, S)
# ----------------------------------------------------------------------------
def _group_attn_kernel(q_ref, kv_ref, wq_ref, bq_ref, wk_ref, bk_ref, *rest,
                       batch_block, seq_len, num_heads, head_dim, scale,
                       compute_dtype, use_blur, approx_recip):
    if use_blur:
        blur_ref, out_ref = rest
    else:
        (out_ref,) = rest

    cdt = compute_dtype
    bb, S, H = batch_block, seq_len, head_dim

    # Merge (bb, S) -> bb*S rows (free: lanes stay H) so the fused projection
    # matmuls get a larger MXU M dimension.
    x_q = q_ref[...].reshape(bb * S, H).astype(cdt)     # (bb*S, H)
    x_kv = kv_ref[...].reshape(bb * S, H).astype(cdt)   # (bb*S, H)
    wq = wq_ref[...].astype(cdt)                         # (H, nH*H)
    wk = wk_ref[...].astype(cdt)
    bq = bq_ref[...].astype(jnp.float32)                 # (1, nH*H)
    bk = bk_ref[...].astype(jnp.float32)

    # One lane-dense projection matmul for ALL heads & all bb batch rows per
    # operand (f32 accumulation).
    Q = jnp.dot(x_q, wq, preferred_element_type=jnp.float32) + bq    # (bb*S, nH*H)
    K = jnp.dot(x_kv, wk, preferred_element_type=jnp.float32) + bk   # (bb*S, nH*H)

    # Fold scale / sqrt(d) into Q once instead of scaling every (S, S) score map.
    Qc = (Q * scale).astype(cdt)
    Kc = K.astype(cdt)

    if use_blur:
        bm = blur_ref[...].astype(cdt)                   # (S, S), loaded once

    # Static unroll over (batch-in-block, head) — reuses the resident Q/K.
    for b in range(bb):
        rlo = b * S
        for h in range(num_heads):
            clo = h * H
            Qh = Qc[rlo:rlo + S, clo:clo + H]            # static sublane/lane slice
            Kh = Kc[rlo:rlo + S, clo:clo + H]

            # Qh @ Kh.T without materializing a transpose (contract dim 1 of both).
            scores = lax.dot_general(
                Qh, Kh, dimension_numbers=(((1,), (1,)), ((), ())),
                preferred_element_type=jnp.float32)                   # (S, S)

            # Softmax in f32.
            scores = scores - jnp.max(scores, axis=-1, keepdims=True)
            p = jnp.exp(scores)
            denom = jnp.sum(p, axis=-1, keepdims=True)
            if approx_recip:
                attn = p * pl.reciprocal(denom, approx=True)   # EUP slot, ~free
            else:
                attn = p / denom

            if use_blur:
                # blur(A) = Bm @ A @ Bm.T ; right factor via dot_general (no .T).
                # TODO(synk): for large seq_len exploit the banded structure of
                # Bm (kernel_size shifted adds via pltpu.roll) instead of dense
                # matmuls.
                t = lax.dot_general(
                    attn.astype(cdt), bm,
                    dimension_numbers=(((1,), (1,)), ((), ())),
                    preferred_element_type=jnp.float32)               # A @ Bm.T
                res = jnp.dot(bm, t.astype(cdt),
                              preferred_element_type=jnp.float32)
            else:
                res = attn

            out_ref[b, h] = res.astype(out_ref.dtype)


def _maybe_downcast(x, cdt):
    # Only narrow (halve DMA bytes); never widen host-side.
    return x.astype(cdt) if jnp.dtype(cdt).itemsize < x.dtype.itemsize else x


def _auto_batch_block(bsz, seq, hidden, nh, in_bytes, out_bytes,
                      budget_bytes=6 * 1024 * 1024, cap=8):
    # Rough per-batch-element VMEM cost: double-buffered in/out blocks plus the
    # f32 Q/K intermediates.
    per_b = (2 * (2 * seq * hidden * in_bytes)          # q + kv, double-buffered
             + 2 * (nh * seq * seq * out_bytes)         # output block, double-buffered
             + 2 * seq * nh * hidden * 4)               # Q, K (f32)
    limit = max(1, budget_bytes // max(per_b, 1))
    limit = min(limit, bsz, cap)
    for bb in range(limit, 0, -1):
        if bsz % bb == 0:
            return bb
    return 1


# ----------------------------------------------------------------------------
# Wrapper (eval-mode forward).
#   epoch == -1 / epoch >= num_heads  -> num_heads_use = num_heads (default)
#   eval, epoch < num_heads           -> num_heads_use = (epoch % num_heads) + 1
#   training (single head)            -> a num_heads_use == 1 slice of the same math
# Returns (bsz, num_heads_use, seq_len, seq_len).
# ----------------------------------------------------------------------------
def group_generate_forward(query, key_value, wq, bq, wk, bk, *, scale=1.0,
                           kernel_size=1, sigma=1.0, num_heads_use=None,
                           compute_dtype=jnp.bfloat16, out_dtype=None,
                           approx_recip=None, batch_block=None):
    bsz, seq, hidden = query.shape
    num_heads = wq.shape[0]
    if num_heads_use is None:
        num_heads_use = num_heads
    num_heads_use = min(num_heads_use, num_heads)
    if out_dtype is None:
        out_dtype = query.dtype
    if approx_recip is None:
        approx_recip = np.dtype(compute_dtype) != np.dtype(jnp.float32)

    nh = num_heads_use
    # Fuse per-head Linear params (nH,H,H)/(nH,1,H) into lane-dense (H, nH*H)/(1, nH*H).
    wq_all = jnp.transpose(wq[:nh], (1, 0, 2)).reshape(hidden, nh * hidden)
    wk_all = jnp.transpose(wk[:nh], (1, 0, 2)).reshape(hidden, nh * hidden)
    bq_all = bq[:nh].reshape(1, nh * hidden)
    bk_all = bk[:nh].reshape(1, nh * hidden)

    # Down-cast MXU operands host-side so the DMA moves half the bytes on the
    # bf16 path (biases stay f32 — they feed the f32 accumulator directly).
    query_c = _maybe_downcast(query, compute_dtype)
    kv_c = _maybe_downcast(key_value, compute_dtype)
    wq_all = _maybe_downcast(wq_all, compute_dtype)
    wk_all = _maybe_downcast(wk_all, compute_dtype)

    if batch_block is None:
        batch_block = _auto_batch_block(
            bsz, seq, hidden, nh,
            in_bytes=query_c.dtype.itemsize,
            out_bytes=jnp.dtype(out_dtype).itemsize)
    if bsz % batch_block != 0:
        batch_block = 1
    bb = batch_block

    use_blur = kernel_size > 1
    inputs = [query_c, kv_c, wq_all, bq_all, wk_all, bk_all]
    in_specs = [
        pl.BlockSpec((bb, seq, hidden), lambda b: (b, 0, 0)),       # query
        pl.BlockSpec((bb, seq, hidden), lambda b: (b, 0, 0)),       # key_value
        pl.BlockSpec((hidden, nh * hidden), lambda b: (0, 0)),      # Wq fused (resident)
        pl.BlockSpec((1, nh * hidden), lambda b: (0, 0)),           # bq fused (resident)
        pl.BlockSpec((hidden, nh * hidden), lambda b: (0, 0)),      # Wk fused (resident)
        pl.BlockSpec((1, nh * hidden), lambda b: (0, 0)),           # bk fused (resident)
    ]
    if use_blur:
        blur_mat = gaussian_blur_matrix(seq, kernel_size, sigma)
        inputs.append(_maybe_downcast(blur_mat, compute_dtype))
        in_specs.append(pl.BlockSpec((seq, seq), lambda b: (0, 0)))  # resident

    kernel = functools.partial(
        _group_attn_kernel,
        batch_block=bb, seq_len=seq, num_heads=nh, head_dim=hidden,
        scale=float(scale) / math.sqrt(hidden),
        compute_dtype=compute_dtype, use_blur=use_blur,
        approx_recip=bool(approx_recip))

    # TODO(synk): for seq_len < 128 the (.., S, S) store is not lane-dense; for
    # very large seq_len add a query-row tile axis (blur then needs the banded
    # formulation) so the (S, S) blocks stay inside v7x's 64 MiB VMEM.
    return pl.pallas_call(
        kernel,
        out_shape=jax.ShapeDtypeStruct((bsz, nh, seq, seq), out_dtype),
        grid_spec=pltpu.PrefetchScalarGridSpec(
            num_scalar_prefetch=0,
            grid=(bsz // bb,),                        # one step per batch block
            in_specs=in_specs,
            out_specs=pl.BlockSpec((bb, nh, seq, seq), lambda b: (b, 0, 0, 0)),
        ),
        compiler_params=pltpu.CompilerParams(
            dimension_semantics=("parallel",),        # megacore-shard the batch
            vmem_limit_bytes=32 * 1024 * 1024),
    )(*inputs)


# ----------------------------------------------------------------------------
# Pure-JAX reference (same math) for correctness check.
# ----------------------------------------------------------------------------
def reference_forward(query, key_value, wq, bq, wk, bk, blur_mat, scale):
    hidden = query.shape[-1]
    Q = jnp.einsum('bsh,nhd->bnsd', query, wq) + bq[None]
    K = jnp.einsum('bsh,nhd->bnsd', key_value, wk) + bk[None]
    scores = jnp.einsum('bnsd,bntd->bnst', Q, K) * (scale / math.sqrt(hidden))
    attn = jax.nn.softmax(scores, axis=-1)
    if blur_mat is None:
        return attn
    return jnp.einsum('ij,bnjk,lk->bnil', blur_mat, attn, blur_mat)


if __name__ == "__main__":
    # Small shapes consistent with the module's forward.
    bsz, seq_len, hidden_dim, num_heads = 2, 8, 32, 4
    scale, kernel_size, sigma = 1.0, 3, 1.0   # kernel_size > 1 exercises the blur

    key = jax.random.PRNGKey(0)
    kq, kk, kwq, kbq, kwk, kbk = jax.random.split(key, 6)

    query = jax.random.normal(kq, (bsz, seq_len, hidden_dim), jnp.float32)
    key_value = jax.random.normal(kk, (bsz, seq_len, hidden_dim), jnp.float32)

    # Per-head Linear params (nn.Linear-style uniform init), stored (in, out)
    # so y = x @ W + b.
    bound = 1.0 / math.sqrt(hidden_dim)
    wq = jax.random.uniform(kwq, (num_heads, hidden_dim, hidden_dim),
                            jnp.float32, -bound, bound)
    bq = jax.random.uniform(kbq, (num_heads, 1, hidden_dim),
                            jnp.float32, -bound, bound)
    wk = jax.random.uniform(kwk, (num_heads, hidden_dim, hidden_dim),
                            jnp.float32, -bound, bound)
    bk = jax.random.uniform(kbk, (num_heads, 1, hidden_dim),
                            jnp.float32, -bound, bound)

    blur_mat = gaussian_blur_matrix(seq_len, kernel_size, sigma)
    ref = reference_forward(query, key_value, wq, bq, wk, bk, blur_mat, scale)

    # 1) f32 compute path, auto batch block (single fused grid step here).
    out32 = group_generate_forward(query, key_value, wq, bq, wk, bk,
                                   scale=scale, kernel_size=kernel_size,
                                   sigma=sigma, compute_dtype=jnp.float32)
    out32 = jax.block_until_ready(out32)
    assert out32.shape == (bsz, num_heads, seq_len, seq_len), out32.shape
    assert jnp.allclose(out32, ref, atol=1e-4, rtol=1e-4), \
        float(jnp.max(jnp.abs(out32 - ref)))

    # 2) no-blur path, batch_block=1 exercises the multi-step grid.
    ref_nb = reference_forward(query, key_value, wq, bq, wk, bk, None, scale)
    out_nb = group_generate_forward(query, key_value, wq, bq, wk, bk,
                                    scale=scale, kernel_size=1, sigma=sigma,
                                    compute_dtype=jnp.float32, batch_block=1)
    out_nb = jax.block_until_ready(out_nb)
    assert jnp.allclose(out_nb, ref_nb, atol=1e-4, rtol=1e-4), \
        float(jnp.max(jnp.abs(out_nb - ref_nb)))

    # 3) partial heads (eval with epoch < num_heads): num_heads_use = 2.
    out_p = group_generate_forward(query, key_value, wq, bq, wk, bk,
                                   scale=scale, kernel_size=kernel_size,
                                   sigma=sigma, num_heads_use=2,
                                   compute_dtype=jnp.float32)
    out_p = jax.block_until_ready(out_p)
    assert out_p.shape == (bsz, 2, seq_len, seq_len), out_p.shape
    assert jnp.allclose(out_p, ref[:, :2], atol=1e-4, rtol=1e-4), \
        float(jnp.max(jnp.abs(out_p - ref[:, :2])))

    # 4) bf16 MXU fast path (f32 accumulation, half DMA bytes) — looser tolerance.
    out16 = group_generate_forward(query, key_value, wq, bq, wk, bk,
                                   scale=scale, kernel_size=kernel_size,
                                   sigma=sigma, compute_dtype=jnp.bfloat16)
    out16 = jax.block_until_ready(out16)
    assert out16.shape == (bsz, num_heads, seq_len, seq_len), out16.shape
    assert jnp.allclose(out16, ref, atol=2e-2, rtol=2e-2), \
        float(jnp.max(jnp.abs(out16 - ref)))

    print("KERNEL_OK")
</pallas_src>

<mosaic_0001>
module attributes {stable_mosaic.version = 11 : i64} {
  func.func @_group_attn_kernel(%arg0: i32, %arg1: memref<2x8x32xf32, #tpu.memory_space<vmem>>, %arg2: memref<2x8x32xf32, #tpu.memory_space<vmem>>, %arg3: memref<32x128xf32, #tpu.memory_space<vmem>>, %arg4: memref<1x128xf32, #tpu.memory_space<vmem>>, %arg5: memref<32x128xf32, #tpu.memory_space<vmem>>, %arg6: memref<1x128xf32, #tpu.memory_space<vmem>>, %arg7: memref<8x8xf32, #tpu.memory_space<vmem>>, %arg8: memref<2x4x8x8xf32, #tpu.memory_space<vmem>>) attributes {dimension_semantics = [#tpu.dimension_semantics<parallel>], iteration_bounds = array<i64: 1>, scalar_prefetch = 0 : i64, scratch_operands = 0 : i64, tpu.core_type = #tpu.core_type<tc>, window_params = [{transform_indices = @transform_0, window_bounds = array<i64: 2, 8, 32>}, {transform_indices = @transform_1, window_bounds = array<i64: 2, 8, 32>}, {pipeline_mode = #tpu.pipeline_mode<synchronous>, transform_indices = @transform_2, window_bounds = array<i64: 32, 128>}, {pipeline_mode = #tpu.pipeline_mode<synchronous>, transform_indices = @transform_3, window_bounds = array<i64: 1, 128>}, {pipeline_mode = #tpu.pipeline_mode<synchronous>, transform_indices = @transform_4, window_bounds = array<i64: 32, 128>}, {pipeline_mode = #tpu.pipeline_mode<synchronous>, transform_indices = @transform_5, window_bounds = array<i64: 1, 128>}, {pipeline_mode = #tpu.pipeline_mode<synchronous>, transform_indices = @transform_6, window_bounds = array<i64: 8, 8>}, {transform_indices = @transform_7, window_bounds = array<i64: 2, 4, 8, 8>}]} {
    %c0 = arith.constant 0 : index
    %c0_0 = arith.constant 0 : index
    %c0_1 = arith.constant 0 : index
    %0 = vector.load %arg1[%c0, %c0_0, %c0_1] : memref<2x8x32xf32, #tpu.memory_space<vmem>>, vector<2x8x32xf32>
    %1 = vector.shape_cast %0 : vector<2x8x32xf32> to vector<16x32xf32>
    %c0_2 = arith.constant 0 : index
    %c0_3 = arith.constant 0 : index
    %c0_4 = arith.constant 0 : index
    %2 = vector.load %arg2[%c0_2, %c0_3, %c0_4] : memref<2x8x32xf32, #tpu.memory_space<vmem>>, vector<2x8x32xf32>
    %3 = vector.shape_cast %2 : vector<2x8x32xf32> to vector<16x32xf32>
    %c0_5 = arith.constant 0 : index
    %c0_6 = arith.constant 0 : index
    %4 = vector.load %arg3[%c0_5, %c0_6] : memref<32x128xf32, #tpu.memory_space<vmem>>, vector<32x128xf32>
    %c0_7 = arith.constant 0 : index
    %c0_8 = arith.constant 0 : index
    %5 = vector.load %arg5[%c0_7, %c0_8] : memref<32x128xf32, #tpu.memory_space<vmem>>, vector<32x128xf32>
    %c0_9 = arith.constant 0 : index
    %c0_10 = arith.constant 0 : index
    %6 = vector.load %arg4[%c0_9, %c0_10] : memref<1x128xf32, #tpu.memory_space<vmem>>, vector<1x128xf32>
    %c0_11 = arith.constant 0 : index
    %c0_12 = arith.constant 0 : index
    %7 = vector.load %arg6[%c0_11, %c0_12] : memref<1x128xf32, #tpu.memory_space<vmem>>, vector<1x128xf32>
    %cst = arith.constant dense<0.000000e+00> : vector<16x128xf32>
    %8 = tpu.matmul %1, %4, %cst {dimension_numbers = #tpu.dot_dimension_numbers<[1], [0], [0], [1], [0, 0, 1, 1], [], []>} : vector<16x32xf32>, vector<32x128xf32>, vector<16x128xf32> -> vector<16x128xf32>
    %9 = vector.broadcast %6 : vector<1x128xf32> to vector<16x128xf32>
    %10 = arith.addf %8, %9 : vector<16x128xf32>
    %cst_13 = arith.constant dense<0.000000e+00> : vector<16x128xf32>
    %11 = tpu.matmul %3, %5, %cst_13 {dimension_numbers = #tpu.dot_dimension_numbers<[1], [0], [0], [1], [0, 0, 1, 1], [], []>} : vector<16x32xf32>, vector<32x128xf32>, vector<16x128xf32> -> vector<16x128xf32>
    %12 = vector.broadcast %7 : vector<1x128xf32> to vector<16x128xf32>
    %13 = arith.addf %11, %12 : vector<16x128xf32>
    %cst_14 = arith.constant 0.176776692 : f32
    %14 = vector.broadcast %cst_14 : f32 to vector<16x128xf32>
    %15 = arith.mulf %10, %14 : vector<16x128xf32>
    %c0_15 = arith.constant 0 : index
    %c0_16 = arith.constant 0 : index
    %16 = vector.load %arg7[%c0_15, %c0_16] : memref<8x8xf32, #tpu.memory_space<vmem>>, vector<8x8xf32>
    %17 = vector.extract_strided_slice %15 {offsets = [0, 0], sizes = [8, 32], strides = [1, 1]} : vector<16x128xf32> to vector<8x32xf32>
    %18 = vector.extract_strided_slice %13 {offsets = [0, 0], sizes = [8, 32], strides = [1, 1]} : vector<16x128xf32> to vector<8x32xf32>
    %cst_17 = arith.constant dense<0.000000e+00> : vector<8x8xf32>
    %19 = tpu.matmul %17, %18, %cst_17 {dimension_numbers = #tpu.dot_dimension_numbers<[1], [1], [0], [0], [0, 0, 1, 0], [], []>} : vector<8x32xf32>, vector<8x32xf32>, vector<8x8xf32> -> vector<8x8xf32>
    %cst_18 = arith.constant dense<0xFF800000> : vector<8xf32>
    %20 = vector.multi_reduction <maximumf>, %19, %cst_18 [1] : vector<8x8xf32> to vector<8xf32>
    %21 = vector.shape_cast %20 : vector<8xf32> to vector<8x1xf32>
    %22 = vector.broadcast %21 : vector<8x1xf32> to vector<8x8xf32>
    %23 = arith.subf %19, %22 : vector<8x8xf32>
    %24 = math.exp %23 : vector<8x8xf32>
    %cst_19 = arith.constant dense<0.000000e+00> : vector<8xf32>
    %25 = vector.multi_reduction <add>, %24, %cst_19 [1] : vector<8x8xf32> to vector<8xf32>
    %26 = vector.shape_cast %25 : vector<8xf32> to vector<8x1xf32>
    %27 = vector.broadcast %26 : vector<8x1xf32> to vector<8x8xf32>
    %28 = arith.divf %24, %27 : vector<8x8xf32>
    %cst_20 = arith.constant dense<0.000000e+00> : vector<8x8xf32>
    %29 = tpu.matmul %28, %16, %cst_20 {dimension_numbers = #tpu.dot_dimension_numbers<[1], [1], [0], [0], [0, 0, 1, 0], [], []>} : vector<8x8xf32>, vector<8x8xf32>, vector<8x8xf32> -> vector<8x8xf32>
    %cst_21 = arith.constant dense<0.000000e+00> : vector<8x8xf32>
    %30 = tpu.matmul %16, %29, %cst_21 {dimension_numbers = #tpu.dot_dimension_numbers<[1], [0], [0], [1], [0, 0, 1, 1], [], []>} : vector<8x8xf32>, vector<8x8xf32>, vector<8x8xf32> -> vector<8x8xf32>
    %c0_22 = arith.constant 0 : index
    %c0_23 = arith.constant 0 : index
    %c0_24 = arith.constant 0 : index
    %c0_25 = arith.constant 0 : index
    %31 = vector.load %arg8[%c0_22, %c0_23, %c0_24, %c0_25] : memref<2x4x8x8xf32, #tpu.memory_space<vmem>>, vector<1x1x8x8xf32>
    %32 = vector.shape_cast %31 : vector<1x1x8x8xf32> to vector<8x8xf32>
    %33 = vector.shape_cast %30 : vector<8x8xf32> to vector<1x1x8x8xf32>
    tpu.vector_store %arg8[%c0_22, %c0_23, %c0_24, %c0_25], %33 {strides = array<i32>} : memref<2x4x8x8xf32, #tpu.memory_space<vmem>>, vector<1x1x8x8xf32>,
    %34 = vector.extract_strided_slice %15 {offsets = [0, 32], sizes = [8, 32], strides = [1, 1]} : vector<16x128xf32> to vector<8x32xf32>
    %35 = vector.extract_strided_slice %13 {offsets = [0, 32], sizes = [8, 32], strides = [1, 1]} : vector<16x128xf32> to vector<8x32xf32>
    %cst_26 = arith.constant dense<0.000000e+00> : vector<8x8xf32>
    %36 = tpu.matmul %34, %35, %cst_26 {dimension_numbers = #tpu.dot_dimension_numbers<[1], [1], [0], [0], [0, 0, 1, 0], [], []>} : vector<8x32xf32>, vector<8x32xf32>, vector<8x8xf32> -> vector<8x8xf32>
    %cst_27 = arith.constant dense<0xFF800000> : vector<8xf32>
    %37 = vector.multi_reduction <maximumf>, %36, %cst_27 [1] : vector<8x8xf32> to vector<8xf32>
    %38 = vector.shape_cast %37 : vector<8xf32> to vector<8x1xf32>
    %39 = vector.broadcast %38 : vector<8x1xf32> to vector<8x8xf32>
    %40 = arith.subf %36, %39 : vector<8x8xf32>
    %41 = math.exp %40 : vector<8x8xf32>
    %cst_28 = arith.constant dense<0.000000e+00> : vector<8xf32>
    %42 = vector.multi_reduction <add>, %41, %cst_28 [1] : vector<8x8xf32> to vector<8xf32>
    %43 = vector.shape_cast %42 : vector<8xf32> to vector<8x1xf32>
    %44 = vector.broadcast %43 : vector<8x1xf32> to vector<8x8xf32>
    %45 = arith.divf %41, %44 : vector<8x8xf32>
    %cst_29 = arith.constant dense<0.000000e+00> : vector<8x8xf32>
    %46 = tpu.matmul %45, %16, %cst_29 {dimension_numbers = #tpu.dot_dimension_numbers<[1], [1], [0], [0], [0, 0, 1, 0], [], []>} : vector<8x8xf32>, vector<8x8xf32>, vector<8x8xf32> -> vector<8x8xf32>
    %cst_30 = arith.constant dense<0.000000e+00> : vector<8x8xf32>
    %47 = tpu.matmul %16, %46, %cst_30 {dimension_numbers = #tpu.dot_dimension_numbers<[1], [0], [0], [1], [0, 0, 1, 1], [], []>} : vector<8x8xf32>, vector<8x8xf32>, vector<8x8xf32> -> vector<8x8xf32>
    %c0_31 = arith.constant 0 : index
    %c1 = arith.constant 1 : index
    %c0_32 = arith.constant 0 : index
    %c0_33 = arith.constant 0 : index
    %48 = vector.load %arg8[%c0_31, %c1, %c0_32, %c0_33] : memref<2x4x8x8xf32, #tpu.memory_space<vmem>>, vector<1x1x8x8xf32>
    %49 = vector.shape_cast %48 : vector<1x1x8x8xf32> to vector<8x8xf32>
    %50 = vector.shape_cast %47 : vector<8x8xf32> to vector<1x1x8x8xf32>
    tpu.vector_store %arg8[%c0_31, %c1, %c0_32, %c0_33], %50 {strides = array<i32>} : memref<2x4x8x8xf32, #tpu.memory_space<vmem>>, vector<1x1x8x8xf32>,
    %51 = vector.extract_strided_slice %15 {offsets = [0, 64], sizes = [8, 32], strides = [1, 1]} : vector<16x128xf32> to vector<8x32xf32>
    %52 = vector.extract_strided_slice %13 {offsets = [0, 64], sizes = [8, 32], strides = [1, 1]} : vector<16x128xf32> to vector<8x32xf32>
    %cst_34 = arith.constant dense<0.000000e+00> : vector<8x8xf32>
    %53 = tpu.matmul %51, %52, %cst_34 {dimension_numbers = #tpu.dot_dimension_numbers<[1], [1], [0], [0], [0, 0, 1, 0], [], []>} : vector<8x32xf32>, vector<8x32xf32>, vector<8x8xf32> -> vector<8x8xf32>
    %cst_35 = arith.constant dense<0xFF800000> : vector<8xf32>
    %54 = vector.multi_reduction <maximumf>, %53, %cst_35 [1] : vector<8x8xf32> to vector<8xf32>
    %55 = vector.shape_cast %54 : vector<8xf32> to vector<8x1xf32>
    %56 = vector.broadcast %55 : vector<8x1xf32> to vector<8x8xf32>
    %57 = arith.subf %53, %56 : vector<8x8xf32>
    %58 = math.exp %57 : vector<8x8xf32>
    %cst_36 = arith.constant dense<0.000000e+00> : vector<8xf32>
    %59 = vector.multi_reduction <add>, %58, %cst_36 [1] : vector<8x8xf32> to vector<8xf32>
    %60 = vector.shape_cast %59 : vector<8xf32> to vector<8x1xf32>
    %61 = vector.broadcast %60 : vector<8x1xf32> to vector<8x8xf32>
    %62 = arith.divf %58, %61 : vector<8x8xf32>
    %cst_37 = arith.constant dense<0.000000e+00> : vector<8x8xf32>
    %63 = tpu.matmul %62, %16, %cst_37 {dimension_numbers = #tpu.dot_dimension_numbers<[1], [1], [0], [0], [0, 0, 1, 0], [], []>} : vector<8x8xf32>, vector<8x8xf32>, vector<8x8xf32> -> vector<8x8xf32>
    %cst_38 = arith.constant dense<0.000000e+00> : vector<8x8xf32>
    %64 = tpu.matmul %16, %63, %cst_38 {dimension_numbers = #tpu.dot_dimension_numbers<[1], [0], [0], [1], [0, 0, 1, 1], [], []>} : vector<8x8xf32>, vector<8x8xf32>, vector<8x8xf32> -> vector<8x8xf32>
    %c0_39 = arith.constant 0 : index
    %c2 = arith.constant 2 : index
    %c0_40 = arith.constant 0 : index
    %c0_41 = arith.constant 0 : index
    %65 = vector.load %arg8[%c0_39, %c2, %c0_40, %c0_41] : memref<2x4x8x8xf32, #tpu.memory_space<vmem>>, vector<1x1x8x8xf32>
    %66 = vector.shape_cast %65 : vector<1x1x8x8xf32> to vector<8x8xf32>
    %67 = vector.shape_cast %64 : vector<8x8xf32> to vector<1x1x8x8xf32>
    tpu.vector_store %arg8[%c0_39, %c2, %c0_40, %c0_41], %67 {strides = array<i32>} : memref<2x4x8x8xf32, #tpu.memory_space<vmem>>, vector<1x1x8x8xf32>,
    %68 = vector.extract_strided_slice %15 {offsets = [0, 96], sizes = [8, 32], strides = [1, 1]} : vector<16x128xf32> to vector<8x32xf32>
    %69 = vector.extract_strided_slice %13 {offsets = [0, 96], sizes = [8, 32], strides = [1, 1]} : vector<16x128xf32> to vector<8x32xf32>
    %cst_42 = arith.constant dense<0.000000e+00> : vector<8x8xf32>
    %70 = tpu.matmul %68, %69, %cst_42 {dimension_numbers = #tpu.dot_dimension_numbers<[1], [1], [0], [0], [0, 0, 1, 0], [], []>} : vector<8x32xf32>, vector<8x32xf32>, vector<8x8xf32> -> vector<8x8xf32>
    %cst_43 = arith.constant dense<0xFF800000> : vector<8xf32>
    %71 = vector.multi_reduction <maximumf>, %70, %cst_43 [1] : vector<8x8xf32> to vector<8xf32>
    %72 = vector.shape_cast %71 : vector<8xf32> to vector<8x1xf32>
    %73 = vector.broadcast %72 : vector<8x1xf32> to vector<8x8xf32>
    %74 = arith.subf %70, %73 : vector<8x8xf32>
    %75 = math.exp %74 : vector<8x8xf32>
    %cst_44 = arith.constant dense<0.000000e+00> : vector<8xf32>
    %76 = vector.multi_reduction <add>, %75, %cst_44 [1] : vector<8x8xf32> to vector<8xf32>
    %77 = vector.shape_cast %76 : vector<8xf32> to vector<8x1xf32>
    %78 = vector.broadcast %77 : vector<8x1xf32> to vector<8x8xf32>
    %79 = arith.divf %75, %78 : vector<8x8xf32>
    %cst_45 = arith.constant dense<0.000000e+00> : vector<8x8xf32>
    %80 = tpu.matmul %79, %16, %cst_45 {dimension_numbers = #tpu.dot_dimension_numbers<[1], [1], [0], [0], [0, 0, 1, 0], [], []>} : vector<8x8xf32>, vector<8x8xf32>, vector<8x8xf32> -> vector<8x8xf32>
    %cst_46 = arith.constant dense<0.000000e+00> : vector<8x8xf32>
    %81 = tpu.matmul %16, %80, %cst_46 {dimension_numbers = #tpu.dot_dimension_numbers<[1], [0], [0], [1], [0, 0, 1, 1], [], []>} : vector<8x8xf32>, vector<8x8xf32>, vector<8x8xf32> -> vector<8x8xf32>
    %c0_47 = arith.constant 0 : index
    %c3 = arith.constant 3 : index
    %c0_48 = arith.constant 0 : index
    %c0_49 = arith.constant 0 : index
    %82 = vector.load %arg8[%c0_47, %c3, %c0_48, %c0_49] : memref<2x4x8x8xf32, #tpu.memory_space<vmem>>, vector<1x1x8x8xf32>
    %83 = vector.shape_cast %82 : vector<1x1x8x8xf32> to vector<8x8xf32>
    %84 = vector.shape_cast %81 : vector<8x8xf32> to vector<1x1x8x8xf32>
    tpu.vector_store %arg8[%c0_47, %c3, %c0_48, %c0_49], %84 {strides = array<i32>} : memref<2x4x8x8xf32, #tpu.memory_space<vmem>>, vector<1x1x8x8xf32>,
    %85 = vector.extract_strided_slice %15 {offsets = [8, 0], sizes = [8, 32], strides = [1, 1]} : vector<16x128xf32> to vector<8x32xf32>
    %86 = vector.extract_strided_slice %13 {offsets = [8, 0], sizes = [8, 32], strides = [1, 1]} : vector<16x128xf32> to vector<8x32xf32>
    %cst_50 = arith.constant dense<0.000000e+00> : vector<8x8xf32>
    %87 = tpu.matmul %85, %86, %cst_50 {dimension_numbers = #tpu.dot_dimension_numbers<[1], [1], [0], [0], [0, 0, 1, 0], [], []>} : vector<8x32xf32>, vector<8x32xf32>, vector<8x8xf32> -> vector<8x8xf32>
    %cst_51 = arith.constant dense<0xFF800000> : vector<8xf32>
    %88 = vector.multi_reduction <maximumf>, %87, %cst_51 [1] : vector<8x8xf32> to vector<8xf32>
    %89 = vector.shape_cast %88 : vector<8xf32> to vector<8x1xf32>
    %90 = vector.broadcast %89 : vector<8x1xf32> to vector<8x8xf32>
    %91 = arith.subf %87, %90 : vector<8x8xf32>
    %92 = math.exp %91 : vector<8x8xf32>
    %cst_52 = arith.constant dense<0.000000e+00> : vector<8xf32>
    %93 = vector.multi_reduction <add>, %92, %cst_52 [1] : vector<8x8xf32> to vector<8xf32>
    %94 = vector.shape_cast %93 : vector<8xf32> to vector<8x1xf32>
    %95 = vector.broadcast %94 : vector<8x1xf32> to vector<8x8xf32>
    %96 = arith.divf %92, %95 : vector<8x8xf32>
    %cst_53 = arith.constant dense<0.000000e+00> : vector<8x8xf32>
    %97 = tpu.matmul %96, %16, %cst_53 {dimension_numbers = #tpu.dot_dimension_numbers<[1], [1], [0], [0], [0, 0, 1, 0], [], []>} : vector<8x8xf32>, vector<8x8xf32>, vector<8x8xf32> -> vector<8x8xf32>
    %cst_54 = arith.constant dense<0.000000e+00> : vector<8x8xf32>
    %98 = tpu.matmul %16, %97, %cst_54 {dimension_numbers = #tpu.dot_dimension_numbers<[1], [0], [0], [1], [0, 0, 1, 1], [], []>} : vector<8x8xf32>, vector<8x8xf32>, vector<8x8xf32> -> vector<8x8xf32>
    %c1_55 = arith.constant 1 : index
    %c0_56 = arith.constant 0 : index
    %c0_57 = arith.constant 0 : index
    %c0_58 = arith.constant 0 : index
    %99 = vector.load %arg8[%c1_55, %c0_56, %c0_57, %c0_58] : memref<2x4x8x8xf32, #tpu.memory_space<vmem>>, vector<1x1x8x8xf32>
    %100 = vector.shape_cast %99 : vector<1x1x8x8xf32> to vector<8x8xf32>
    %101 = vector.shape_cast %98 : vector<8x8xf32> to vector<1x1x8x8xf32>
    tpu.vector_store %arg8[%c1_55, %c0_56, %c0_57, %c0_58], %101 {strides = array<i32>} : memref<2x4x8x8xf32, #tpu.memory_space<vmem>>, vector<1x1x8x8xf32>,
    %102 = vector.extract_strided_slice %15 {offsets = [8, 32], sizes = [8, 32], strides = [1, 1]} : vector<16x128xf32> to vector<8x32xf32>
    %103 = vector.extract_strided_slice %13 {offsets = [8, 32], sizes = [8, 32], strides = [1, 1]} : vector<16x128xf32> to vector<8x32xf32>
    %cst_59 = arith.constant dense<0.000000e+00> : vector<8x8xf32>
    %104 = tpu.matmul %102, %103, %cst_59 {dimension_numbers = #tpu.dot_dimension_numbers<[1], [1], [0], [0], [0, 0, 1, 0], [], []>} : vector<8x32xf32>, vector<8x32xf32>, vector<8x8xf32> -> vector<8x8xf32>
    %cst_60 = arith.constant dense<0xFF800000> : vector<8xf32>
    %105 = vector.multi_reduction <maximumf>, %104, %cst_60 [1] : vector<8x8xf32> to vector<8xf32>
    %106 = vector.shape_cast %105 : vector<8xf32> to vector<8x1xf32>
    %107 = vector.broadcast %106 : vector<8x1xf32> to vector<8x8xf32>
    %108 = arith.subf %104, %107 : vector<8x8xf32>
    %109 = math.exp %108 : vector<8x8xf32>
    %cst_61 = arith.constant dense<0.000000e+00> : vector<8xf32>
    %110 = vector.multi_reduction <add>, %109, %cst_61 [1] : vector<8x8xf32> to vector<8xf32>
    %111 = vector.shape_cast %110 : vector<8xf32> to vector<8x1xf32>
    %112 = vector.broadcast %111 : vector<8x1xf32> to vector<8x8xf32>
    %113 = arith.divf %109, %112 : vector<8x8xf32>
    %cst_62 = arith.constant dense<0.000000e+00> : vector<8x8xf32>
    %114 = tpu.matmul %113, %16, %cst_62 {dimension_numbers = #tpu.dot_dimension_numbers<[1], [1], [0], [0], [0, 0, 1, 0], [], []>} : vector<8x8xf32>, vector<8x8xf32>, vector<8x8xf32> -> vector<8x8xf32>
    %cst_63 = arith.constant dense<0.000000e+00> : vector<8x8xf32>
    %115 = tpu.matmul %16, %114, %cst_63 {dimension_numbers = #tpu.dot_dimension_numbers<[1], [0], [0], [1], [0, 0, 1, 1], [], []>} : vector<8x8xf32>, vector<8x8xf32>, vector<8x8xf32> -> vector<8x8xf32>
    %c1_64 = arith.constant 1 : index
    %c1_65 = arith.constant 1 : index
    %c0_66 = arith.constant 0 : index
    %c0_67 = arith.constant 0 : index
    %116 = vector.load %arg8[%c1_64, %c1_65, %c0_66, %c0_67] : memref<2x4x8x8xf32, #tpu.memory_space<vmem>>, vector<1x1x8x8xf32>
    %117 = vector.shape_cast %116 : vector<1x1x8x8xf32> to vector<8x8xf32>
    %118 = vector.shape_cast %115 : vector<8x8xf32> to vector<1x1x8x8xf32>
    tpu.vector_store %arg8[%c1_64, %c1_65, %c0_66, %c0_67], %118 {strides = array<i32>} : memref<2x4x8x8xf32, #tpu.memory_space<vmem>>, vector<1x1x8x8xf32>,
    %119 = vector.extract_strided_slice %15 {offsets = [8, 64], sizes = [8, 32], strides = [1, 1]} : vector<16x128xf32> to vector<8x32xf32>
    %120 = vector.extract_strided_slice %13 {offsets = [8, 64], sizes = [8, 32], strides = [1, 1]} : vector<16x128xf32> to vector<8x32xf32>
    %cst_68 = arith.constant dense<0.000000e+00> : vector<8x8xf32>
    %121 = tpu.matmul %119, %120, %cst_68 {dimension_numbers = #tpu.dot_dimension_numbers<[1], [1], [0], [0], [0, 0, 1, 0], [], []>} : vector<8x32xf32>, vector<8x32xf32>, vector<8x8xf32> -> vector<8x8xf32>
    %cst_69 = arith.constant dense<0xFF800000> : vector<8xf32>
    %122 = vector.multi_reduction <maximumf>, %121, %cst_69 [1] : vector<8x8xf32> to vector<8xf32>
    %123 = vector.shape_cast %122 : vector<8xf32> to vector<8x1xf32>
    %124 = vector.broadcast %123 : vector<8x1xf32> to vector<8x8xf32>
    %125 = arith.subf %121, %124 : vector<8x8xf32>
    %126 = math.exp %125 : vector<8x8xf32>
    %cst_70 = arith.constant dense<0.000000e+00> : vector<8xf32>
    %127 = vector.multi_reduction <add>, %126, %cst_70 [1] : vector<8x8xf32> to vector<8xf32>
    %128 = vector.shape_cast %127 : vector<8xf32> to vector<8x1xf32>
    %129 = vector.broadcast %128 : vector<8x1xf32> to vector<8x8xf32>
    %130 = arith.divf %126, %129 : vector<8x8xf32>
    %cst_71 = arith.constant dense<0.000000e+00> : vector<8x8xf32>
    %131 = tpu.matmul %130, %16, %cst_71 {dimension_numbers = #tpu.dot_dimension_numbers<[1], [1], [0], [0], [0, 0, 1, 0], [], []>} : vector<8x8xf32>, vector<8x8xf32>, vector<8x8xf32> -> vector<8x8xf32>
    %cst_72 = arith.constant dense<0.000000e+00> : vector<8x8xf32>
    %132 = tpu.matmul %16, %131, %cst_72 {dimension_numbers = #tpu.dot_dimension_numbers<[1], [0], [0], [1], [0, 0, 1, 1], [], []>} : vector<8x8xf32>, vector<8x8xf32>, vector<8x8xf32> -> vector<8x8xf32>
    %c1_73 = arith.constant 1 : index
    %c2_74 = arith.constant 2 : index
    %c0_75 = arith.constant 0 : index
    %c0_76 = arith.constant 0 : index
    %133 = vector.load %arg8[%c1_73, %c2_74, %c0_75, %c0_76] : memref<2x4x8x8xf32, #tpu.memory_space<vmem>>, vector<1x1x8x8xf32>
    %134 = vector.shape_cast %133 : vector<1x1x8x8xf32> to vector<8x8xf32>
    %135 = vector.shape_cast %132 : vector<8x8xf32> to vector<1x1x8x8xf32>
    tpu.vector_store %arg8[%c1_73, %c2_74, %c0_75, %c0_76], %135 {strides = array<i32>} : memref<2x4x8x8xf32, #tpu.memory_space<vmem>>, vector<1x1x8x8xf32>,
    %136 = vector.extract_strided_slice %15 {offsets = [8, 96], sizes = [8, 32], strides = [1, 1]} : vector<16x128xf32> to vector<8x32xf32>
    %137 = vector.extract_strided_slice %13 {offsets = [8, 96], sizes = [8, 32], strides = [1, 1]} : vector<16x128xf32> to vector<8x32xf32>
    %cst_77 = arith.constant dense<0.000000e+00> : vector<8x8xf32>
    %138 = tpu.matmul %136, %137, %cst_77 {dimension_numbers = #tpu.dot_dimension_numbers<[1], [1], [0], [0], [0, 0, 1, 0], [], []>} : vector<8x32xf32>, vector<8x32xf32>, vector<8x8xf32> -> vector<8x8xf32>
    %cst_78 = arith.constant dense<0xFF800000> : vector<8xf32>
    %139 = vector.multi_reduction <maximumf>, %138, %cst_78 [1] : vector<8x8xf32> to vector<8xf32>
    %140 = vector.shape_cast %139 : vector<8xf32> to vector<8x1xf32>
    %141 = vector.broadcast %140 : vector<8x1xf32> to vector<8x8xf32>
    %142 = arith.subf %138, %141 : vector<8x8xf32>
    %143 = math.exp %142 : vector<8x8xf32>
    %cst_79 = arith.constant dense<0.000000e+00> : vector<8xf32>
    %144 = vector.multi_reduction <add>, %143, %cst_79 [1] : vector<8x8xf32> to vector<8xf32>
    %145 = vector.shape_cast %144 : vector<8xf32> to vector<8x1xf32>
    %146 = vector.broadcast %145 : vector<8x1xf32> to vector<8x8xf32>
    %147 = arith.divf %143, %146 : vector<8x8xf32>
    %cst_80 = arith.constant dense<0.000000e+00> : vector<8x8xf32>
    %148 = tpu.matmul %147, %16, %cst_80 {dimension_numbers = #tpu.dot_dimension_numbers<[1], [1], [0], [0], [0, 0, 1, 0], [], []>} : vector<8x8xf32>, vector<8x8xf32>, vector<8x8xf32> -> vector<8x8xf32>
    %cst_81 = arith.constant dense<0.000000e+00> : vector<8x8xf32>
    %149 = tpu.matmul %16, %148, %cst_81 {dimension_numbers = #tpu.dot_dimension_numbers<[1], [0], [0], [1], [0, 0, 1, 1], [], []>} : vector<8x8xf32>, vector<8x8xf32>, vector<8x8xf32> -> vector<8x8xf32>
    %c1_82 = arith.constant 1 : index
    %c3_83 = arith.constant 3 : index
    %c0_84 = arith.constant 0 : index
    %c0_85 = arith.constant 0 : index
    %150 = vector.load %arg8[%c1_82, %c3_83, %c0_84, %c0_85] : memref<2x4x8x8xf32, #tpu.memory_space<vmem>>, vector<1x1x8x8xf32>
    %151 = vector.shape_cast %150 : vector<1x1x8x8xf32> to vector<8x8xf32>
    %152 = vector.shape_cast %149 : vector<8x8xf32> to vector<1x1x8x8xf32>
    tpu.vector_store %arg8[%c1_82, %c3_83, %c0_84, %c0_85], %152 {strides = array<i32>} : memref<2x4x8x8xf32, #tpu.memory_space<vmem>>, vector<1x1x8x8xf32>,
    return
  }
  func.func @transform_0(%arg0: i32) -> (i32, i32, i32) {
    %c0_i32 = arith.constant 0 : i32
    %c0_i32_0 = arith.constant 0 : i32
    %c0_i32_1 = arith.constant 0 : i32
    return %arg0, %c0_i32, %c0_i32_0 : i32, i32, i32
  }
  func.func @transform_1(%arg0: i32) -> (i32, i32, i32) {
    %c0_i32 = arith.constant 0 : i32
    %c0_i32_0 = arith.constant 0 : i32
    %c0_i32_1 = arith.constant 0 : i32
    return %arg0, %c0_i32, %c0_i32_0 : i32, i32, i32
  }
  func.func @transform_2(%arg0: i32) -> (i32, i32) {
    %c0_i32 = arith.constant 0 : i32
    %c0_i32_0 = arith.constant 0 : i32
    %c0_i32_1 = arith.constant 0 : i32
    return %c0_i32, %c0_i32_0 : i32, i32
  }
  func.func @transform_3(%arg0: i32) -> (i32, i32) {
    %c0_i32 = arith.constant 0 : i32
    %c0_i32_0 = arith.constant 0 : i32
    %c0_i32_1 = arith.constant 0 : i32
    return %c0_i32, %c0_i32_0 : i32, i32
  }
  func.func @transform_4(%arg0: i32) -> (i32, i32) {
    %c0_i32 = arith.constant 0 : i32
    %c0_i32_0 = arith.constant 0 : i32
    %c0_i32_1 = arith.constant 0 : i32
    return %c0_i32, %c0_i32_0 : i32, i32
  }
  func.func @transform_5(%arg0: i32) -> (i32, i32) {
    %c0_i32 = arith.constant 0 : i32
    %c0_i32_0 = arith.constant 0 : i32
    %c0_i32_1 = arith.constant 0 : i32
    return %c0_i32, %c0_i32_0 : i32, i32
  }
  func.func @transform_6(%arg0: i32) -> (i32, i32) {
    %c0_i32 = arith.constant 0 : i32
    %c0_i32_0 = arith.constant 0 : i32
    %c0_i32_1 = arith.constant 0 : i32
    return %c0_i32, %c0_i32_0 : i32, i32
  }
  func.func @transform_7(%arg0: i32) -> (i32, i32, i32, i32) {
    %c0_i32 = arith.constant 0 : i32
    %c0_i32_0 = arith.constant 0 : i32
    %c0_i32_1 = arith.constant 0 : i32
    %c0_i32_2 = arith.constant 0 : i32
    return %arg0, %c0_i32, %c0_i32_0, %c0_i32_1 : i32, i32, i32, i32
  }
}

</mosaic_0001>

<bundles_post_ra>
// kernel: tpu_custom_call.1
= control target key start
LH: loop header
LB: loop body
LE: loop exit
PB: predicated region body
PF: predicated region fallthrough
CT: control target
= control target key end

     0   :  { %12 = vsyncpa [#allocation3], 0  ;;  %s1424_s0 = inlined_call_operand.hbm [shape: f32[2,8,32], index: 0, kind: input, shape index: {}]   ;;  %s1425_s1 = inlined_call_operand.hbm [shape: f32[2,8,32], index: 1, kind: input, shape index: {}]   ;;  %s1426_s2 = inlined_call_operand.hbm [shape: f32[32,128], index: 2, kind: input, shape index: {}]   ;;  %s1427_s3 = inlined_call_operand.vmem [shape: f32[1,128], index: 3, kind: input, shape index: {}]   ;;  %s1428_s4 = inlined_call_operand.hbm [shape: f32[32,128], index: 4, kind: input, shape index: {}]   ;;  %s1429_s5 = inlined_call_operand.vmem [shape: f32[1,128], index: 5, kind: input, shape index: {}]   ;;  %s1430_s6 = inlined_call_operand.hbm [shape: f32[8,8], index: 6, kind: input, shape index: {}]   ;;  %s1431_s7 = inlined_call_operand.hbm [shape: f32[2,4,8,8], index: 7, kind: output, shape index: {}]  }
   0x1   :  { %13 = vsyncpa [#allocation6], 0 }
   0x2   :  { %14 = vsyncpa [#allocation9], 0 }
   0x3   :  { %15 = vsyncpa [#allocation4], 0  ;;  %s33_s26 = sshll.u32 %s1425_s1, 4  ;;  %s1222_s27 = smov [#allocation5]   ;;  %s34_s26 = int_to_ptr.hbm [resolvable:$true] %s33_s26 }
   0x4   :  { %s35_s28 = sshll.u32 %s1222_s27, 4  ;;  %s61_s8 = sshll.u32 %s1428_s4, 4  ;;  %s36_s28 = int_to_ptr.vmem [resolvable:$true] %s35_s28  ;;  %s62_s8 = int_to_ptr.hbm [resolvable:$true] %s61_s8 }
   0x5   :  { %s1223_s9 = smov 128   ;;  %s1224_s10 = smov 8  }
   0x6   :  { %41 = dma.hbm_to_vmem [thread:$0]  %s34_s26, 256, %s36_s28, [#allocation6], %s1223_s9, %s1223_s9, %s1224_s10  }
   0x7   :  { %s1225_s11 = smov [#allocation8]   ;;  %s20_s1 = sshll.u32 %s1424_s0, 4  ;;  %s21_s1 = int_to_ptr.hbm [resolvable:$true] %s20_s1 }
   0x8   :  { %s63_s12 = sshll.u32 %s1225_s11, 4  ;;  %s46_s16 = sshll.u32 %s1426_s2, 4  ;;  %s64_s12 = int_to_ptr.vmem [resolvable:$true] %s63_s12  ;;  %s47_s16 = int_to_ptr.hbm [resolvable:$true] %s46_s16 }
   0x9   :  { %69 = dma.hbm_to_vmem [thread:$0]  %s62_s8, 512, %s64_s12, [#allocation9], %s1223_s9, %s1223_s9, %s1224_s10  }
   0xa   :  { %s1226_s17 = smov [#allocation2]   ;;  %s1227_s19 = smov [#allocation7]  }
   0xb   :  { %s22_s18 = sshll.u32 %s1226_s17, 4  ;;  %s48_s0 = sshll.u32 %s1227_s19, 4  ;;  %s23_s18 = int_to_ptr.vmem [resolvable:$true] %s22_s18  ;;  %s49_s0 = int_to_ptr.vmem [resolvable:$true] %s48_s0 }
   0xc   :  { %28 = dma.hbm_to_vmem [thread:$0]  %s21_s1, 256, %s23_s18, [#allocation3], %s1223_s9, %s1223_s9, %s1224_s10  }
   0xd   :  { %s77_s22 = sshll.u32 %s1430_s6, 4  ;;  %s1228_s2 = smov [#allocation10]   ;;  %s78_s22 = int_to_ptr.hbm [resolvable:$true] %s77_s22 }
   0xe   :  { %54 = dma.hbm_to_vmem [thread:$0]  %s47_s16, 512, %s49_s0, [#allocation6], %s1223_s9, %s1223_s9, %s1224_s10  }
   0xf   :  { %s79_s23 = sshll.u32 %s1228_s2, 4  ;;  %s80_s23 = int_to_ptr.vmem [resolvable:$true] %s79_s23 }
  0x10   :  { %82 = dma.hbm_to_vmem [thread:$0]  %s78_s22, 128, %s80_s23, [#allocation9]  }
  0x11   :  { %1214 = dma.done.wait [#allocation3], 256  }
  0x12   :  { %1215 = vsyncadd [#allocation3], 4294967040 }
  0x13   :  { %1216 = dma.done.wait [#allocation6], 768  }
  0x14   :  { %1217 = vsyncadd [#allocation6], 4294966528 }
  0x15   :  { %1218 = dma.done.wait [#allocation9], 640  }
  0x16   :  { %1219 = vsyncadd [#allocation9], 4294966656  ;;  %v114_v0 = vld [vmem:[#allocation8 + $0x18] sm:$0xff]  ;;  %v113_v2 = vld [vmem:[#allocation8 + $0x10] sm:$0xff]  ;;  %vm120_vm0 = vcmask 261120   ;;  %vm211_vm1 = vcmask 64512  }
  0x17   :  { %v110_v1 = vld [vmem:[#allocation7 + $0x18] sm:$0xff]  ;;  %171 = vmatpush.msra.mxu1 %v114_v0  ;;  %v109_v3 = vld [vmem:[#allocation7 + $0x10] sm:$0xff]  ;;  %v112_v4 = vld [vmem:[#allocation8 + $0x8] sm:$0xff]  ;;  %s1229_s27 = smov 96   ;;  %s1232_s28 = smov [#allocation11]  }
  0x18   :  { %139 = vmatpush.msra.mxu0 %v110_v1  ;;  %v108_v5 = vld [vmem:[#allocation7 + $0x8] sm:$0xff]  ;;  %v111_v6 = vld [vmem:[#allocation8] sm:$0xff]  ;;  %v105_v8 = vld [vmem:[#allocation5] sm:$0xff]  ;;  %s964_s29 = sshll.u32 %s1232_s28, 4  ;;  %s966_s11 = sshll.u32 %s1431_s7, 4  ;;  %s965_s29 = int_to_ptr.vmem [resolvable:$true] %s964_s29  ;;  %s967_s11 = int_to_ptr.hbm [resolvable:$true] %s966_s11 }
  0x19   :  { %172 = vmatpush.msra.mxu1 %v113_v2  ;;  %v107_v7 = vld [vmem:[#allocation7] sm:$0xff]  ;;  %v104_v48 = vld [vmem:[#allocation2 + $0x8] sm:$0xff]  ;;  %v106_v0 = vld [vmem:[#allocation5 + $0x8] sm:$0xff] }
  0x1a   :  { %140 = vmatpush.msra.mxu0 %v109_v3  ;;  %v103_v9 = vld [vmem:[#allocation2] sm:$0xff] }
  0x1b   :  { %173 = vmatpush.msra.mxu1 %v112_v4  ;;  %v1302_v10 = vld [vmem:[#allocation10] sm:$0xff] }
  0x1c   :  { %141 = vmatpush.msra.mxu0 %v108_v5  ;;  %987 = vmatpush.xpose.msk.msra.mxu3 %vm211_vm1, %v1302_v10  ;;  %v1311_v11 = vld [vmem:[%s1429_s5] ss:$0 sm:$0xff]  ;;  %s1230_s5 = smov 32  }
  0x1d   :  { %174 = vmatpush.msra.mxu1 %v111_v6  ;;  %v1316_v12 = vld [vmem:[%s1427_s3] ss:$0 sm:$0xff]  ;;  %s1231_s3 = smov 64  }
  0x1e   :  { %142 = vmatpush.msra.mxu0 %v107_v7  ;;  %983 = vmatmul.msk.f32.vlgmr.msra.gmra.mxu1 %vm120_vm0, %v105_v8 }
  0x1f   :  { %981 = vmatmul.msk.f32.vlgmr.msra.gmra.mxu0 %vm120_vm0, %v103_v9  ;;  %997 = vmatpush.xpose.msk.msrb.mxu1 %vm211_vm1, %v1302_v10 }
  0x26   :  { %984 = vmatmul.msk.f32.gmra.mxu1 %vm120_vm0, %v106_v0 }
  0x27   :  { %982 = vmatmul.msk.f32.gmra.mxu0 %vm120_vm0, %v104_v48 }
  0x9b   :  { %v176_v13 = vpop.f32.mrf.mxu1 }
  0x9c   :  { %v144_v14 = vpop.f32.mrf.mxu0  ;;  %v177_v15 = vadd.f32 %v1311_v11, %v176_v13 }
  0x9d   :  { %v145_v16 = vadd.f32 %v1316_v12, %v144_v14 }
  0x9e   :  { %285 = vrot.lane.b32.xlu1 %v177_v15, %s1229_s27  ;;  %985 = vmatpush.xpose.msk.msra.mxu2 %vm120_vm0, %v177_v15 }
  0x9f   :  { %v182_v17 = vmul.f32 0.17677669, %v145_v16 }
  0xa1   :  { %986 = vmatmul.msk.f32.vlgmr.msra.gmra.mxu2 %vm120_vm0, %v182_v17 }
  0xa4   :  { %v147_v63 = vpop.f32.mrf.mxu0 }
  0xa5   :  { %v148_v14 = vadd.f32 %v1316_v12, %v147_v63 }
  0xa6   :  { %283 = vrot.lane.b32.xlu1 %v182_v17, %s1229_s27 }
  0xa7   :  { %v183_v16 = vmul.f32 0.17677669, %v148_v14 }
  0xae   :  { %479 = vrot.lane.b32.xlu1 %v177_v15, %s1230_s5 }
  0xb6   :  { %477 = vrot.lane.b32.xlu1 %v182_v17, %s1230_s5 }
 0x110   :  { %v286_v18 = vpop.permute.xlu1 %285 }
 0x111   :  { %990 = vmatpush.xpose.msk.msrb.mxu3 %vm120_vm0, %v286_v18 }
 0x118   :  { %v284_v39 = vpop.permute.xlu1 %283 }
 0x120   :  { %v480_v3 = vpop.permute.xlu1 %479 }
 0x124   :  { %v208_v19 = vpop.f32.mrf.mxu2 }
 0x125   :  { %v212_v20 = vsel %vm211_vm1, %v208_v19, -inf }
 0x126   :  { %213 = vmax.xlane.f32.xlu0 %v212_v20 }
 0x128   :  { %v478_v5 = vpop.permute.xlu1 %477 }
 0x199   :  { %v214_v21 = vpop.xlane.xlu0 %213 }
 0x19a   :  { %v215_v22 = vsub.f32 %v208_v19, %v214_v21 }
 0x19c   :  { %v216_v23 = vmul.f32 1.442695, %v215_v22 }
 0x19e   :  { %1038 = vpow2.f32 %v216_v23 }
 0x1a4   :  { %v1039_v24 = vpop.eup %1038 }
 0x1a5   :  { %v218_v25 = vsel %vm211_vm1, %v1039_v24, 0.0 }
 0x1a6   :  { %219 = vadd.xlane.f32.xlu0 %v218_v25 }
 0x1ba   :  { %382 = vrot.lane.b32.xlu0 %v177_v15, %s1231_s3 }
 0x219   :  { %v220_v26 = vpop.xlane.xlu0 %219 }
 0x21a   :  { %1040 = vrcp.f32 %v220_v26  ;;  %v232_v30 = vand.u32 2147483648, %v220_v26  ;;  %v230_v32 = vand.u32 2147483647, %v220_v26  ;;  %vm226_vm3 = vweird.f32 %v220_v26 }
 0x21c   :  { %v233_v34 = vor.u32 1.1754944e-38, %v232_v30  ;;  %vm231_vm5 = vcmp.eq.f32.partialorder %v230_v32, 8.507059e+37 }
 0x220   :  { %v1041_v27 = vpop.eup %1040 }
 0x221   :  { %v222_v28 = vmul.f32 %v1041_v27, %v220_v26  ;;  %vm227_vm2 = vweird.f32 %v1041_v27 }
 0x222   :  { %vm228_vm4 = vmor %vm226_vm3, %vm227_vm2 }
 0x223   :  { %v223_v29 = vsub.f32 1.0, %v222_v28 }
 0x225   :  { %v224_v31 = vmul.f32 %v1041_v27, %v223_v29 }
 0x227   :  { %v225_v33 = vadd.f32 %v1041_v27, %v224_v31 }
 0x229   :  { %v229_v35 = vsel %vm228_vm4, %v1041_v27, %v225_v33 }
 0x22a   :  { %v234_v36 = vsel %vm231_vm5, %v233_v34, %v229_v35 }
 0x22b   :  { %v235_v37 = vmul.f32 %v1039_v24, %v234_v36 }
 0x22c   :  { %v383_v38 = vpop.permute.xlu0 %382 }
 0x22d   :  { %988 = vmatmul.msk.f32.vlgmr.msra.gmra.mxu3 %vm211_vm1, %v235_v37  ;;  %995 = vmatpush.xpose.msk.msrb.mxu0 %vm120_vm0, %v383_v38 }
 0x231   :  { %1002 = vmatpush.xpose.msk.msra.mxu0 %vm211_vm1, %v1302_v10 }
 0x235   :  { %991 = vmatmul.msk.f32.vlgmr.msrb.gmra.mxu3 %vm120_vm0, %v284_v39 }
 0x2b0   :  { %v259_v40 = vpop.f32.mrf.mxu3 }
 0x2b1   :  { %277 = vmatpush.msrb.mxu2 %v259_v40 }
 0x2b2   :  { %989 = vmatmul.msk.f32.vlgmr.msrb.gmra.mxu2 %vm211_vm1, %v1302_v10 }
 0x2b3   :  { %992 = vmatpush.xpose.msk.msra.mxu2 %vm211_vm1, %v1302_v10 }
 0x2b8   :  { %v308_v41 = vpop.f32.mrf.mxu3 }
 0x2b9   :  { %v311_v42 = vsel %vm211_vm1, %v308_v41, -inf }
 0x2ba   :  { %312 = vmax.xlane.f32.xlu2 %v311_v42 }
 0x32d   :  { %v313_v43 = vpop.xlane.xlu2 %312 }
 0x32e   :  { %v314_v44 = vsub.f32 %v308_v41, %v313_v43 }
 0x330   :  { %v315_v45 = vmul.f32 1.442695, %v314_v44 }
 0x332   :  { %1042 = vpow2.f32 %v315_v45 }
 0x335   :  { %v279_v62 = vpop.f32.mrf.mxu2 }
 0x336   :  { %282 = vst.msk [vmem:[#allocation11] sm:$0xff] %vm211_vm1, %v279_v62 }
 0x338   :  { %v1043_v46 = vpop.eup %1042 }
 0x339   :  { %v317_v47 = vsel %vm211_vm1, %v1043_v46, 0.0 }
 0x33a   :  { %318 = vadd.xlane.f32.xlu2 %v317_v47 }
 0x352   :  { %380 = vrot.lane.b32.xlu2 %v182_v17, %s1231_s3  ;;  %v179_v17 = vpop.f32.mrf.mxu1 }
 0x353   :  { %v1359_v19 = vadd.f32 %v1311_v11, %v179_v17 }
 0x3ad   :  { %v319_v49 = vpop.xlane.xlu2 %318 }
 0x3ae   :  { %1044 = vrcp.f32 %v319_v49  ;;  %v331_v54 = vand.u32 2147483648, %v319_v49  ;;  %v329_v56 = vand.u32 2147483647, %v319_v49  ;;  %vm325_vm7 = vweird.f32 %v319_v49 }
 0x3b0   :  { %v332_v58 = vor.u32 1.1754944e-38, %v331_v54  ;;  %vm330_vm9 = vcmp.eq.f32.partialorder %v329_v56, 8.507059e+37 }
 0x3b4   :  { %v1045_v50 = vpop.eup %1044 }
 0x3b5   :  { %v321_v51 = vmul.f32 %v1045_v50, %v319_v49  ;;  %v381_v52 = vpop.permute.xlu2 %380  ;;  %vm326_vm6 = vweird.f32 %v1045_v50 }
 0x3b6   :  { %996 = vmatmul.msk.f32.vlgmr.msrb.gmra.mxu0 %vm120_vm0, %v381_v52  ;;  %vm327_vm8 = vmor %vm325_vm7, %vm326_vm6 }
 0x3b7   :  { %v322_v53 = vsub.f32 1.0, %v321_v51 }
 0x3b9   :  { %v323_v55 = vmul.f32 %v1045_v50, %v322_v53 }
 0x3bb   :  { %v324_v57 = vadd.f32 %v1045_v50, %v323_v55 }
 0x3bd   :  { %v328_v59 = vsel %vm327_vm8, %v1045_v50, %v324_v57 }
 0x3be   :  { %v333_v60 = vsel %vm330_vm9, %v332_v58, %v328_v59 }
 0x3bf   :  { %v334_v61 = vmul.f32 %v1043_v46, %v333_v60 }
 0x3c1   :  { %993 = vmatmul.msk.f32.vlgmr.msra.gmra.mxu2 %vm211_vm1, %v334_v61 }
 0x433   :  { %v405_v1 = vpop.f32.mrf.mxu0 }
 0x434   :  { %v408_v2 = vsel %vm211_vm1, %v405_v1, -inf }
 0x435   :  { %409 = vmax.xlane.f32.xlu1 %v408_v2 }
 0x444   :  { %v355_v4 = vpop.f32.mrf.mxu2 }
 0x445   :  { %373 = vmatpush.msra.mxu3 %v355_v4 }
 0x446   :  { %994 = vmatmul.msk.f32.vlgmr.msra.gmra.mxu3 %vm211_vm1, %v1302_v10 }
 0x447   :  { %1000 = vmatpush.xpose.msk.msrb.mxu3 %vm120_vm0, %v480_v3 }
 0x44b   :  { %1007 = vmatpush.xpose.msk.msra.mxu3 %vm211_vm1, %v1302_v10 }
 0x44e   :  { %1001 = vmatmul.msk.f32.vlgmr.msrb.gmra.mxu3 %vm120_vm0, %v478_v5 }
 0x4a8   :  { %v410_v6 = vpop.xlane.xlu1 %409 }
 0x4a9   :  { %v411_v7 = vsub.f32 %v405_v1, %v410_v6 }
 0x4ab   :  { %v412_v8 = vmul.f32 1.442695, %v411_v7 }
 0x4ad   :  { %1046 = vpow2.f32 %v412_v8 }
 0x4b3   :  { %v1047_v9 = vpop.eup %1046 }
 0x4b4   :  { %v414_v13 = vsel %vm211_vm1, %v1047_v9, 0.0 }
 0x4b5   :  { %415 = vadd.xlane.f32.xlu2 %v414_v13 }
 0x4c9   :  { %v375_v15 = vpop.f32.mrf.mxu3 }
 0x4ca   :  { %379 = vst.msk [vmem:[#allocation11 + $0x8] sm:$0xff] %vm211_vm1, %v375_v15 }
 0x4cd   :  { %669 = vrot.lane.b32.xlu2 %v183_v16, %s1229_s27 }
 0x4d1   :  { %v502_v18 = vpop.f32.mrf.mxu3 }
 0x4d2   :  { %v505_v20 = vsel %vm211_vm1, %v502_v18, -inf }
 0x4d3   :  { %506 = vmax.xlane.f32.xlu0 %v505_v20 }
 0x4d5   :  { %768 = vrot.lane.b32.xlu2 %v1359_v19, %s1231_s3 }
 0x4dd   :  { %766 = vrot.lane.b32.xlu2 %v183_v16, %s1231_s3 }
 0x4e5   :  { %863 = vrot.lane.b32.xlu2 %v183_v16, %s1230_s5 }
 0x4e7   :  { %671 = vrot.lane.b32.xlu0 %v1359_v19, %s1229_s27 }
 0x528   :  { %v416_v12 = vpop.xlane.xlu2 %415 }
 0x529   :  { %1048 = vrcp.f32 %v416_v12  ;;  %v428_v11 = vand.u32 2147483648, %v416_v12  ;;  %v426_v25 = vand.u32 2147483647, %v416_v12  ;;  %vm422_vm11 = vweird.f32 %v416_v12 }
 0x52b   :  { %v429_v27 = vor.u32 1.1754944e-38, %v428_v11  ;;  %vm427_vm13 = vcmp.eq.f32.partialorder %v426_v25, 8.507059e+37 }
 0x52f   :  { %v1049_v21 = vpop.eup %1048 }
 0x530   :  { %v418_v22 = vmul.f32 %v1049_v21, %v416_v12  ;;  %vm423_vm10 = vweird.f32 %v1049_v21  ;;  %v670_v54 = vpop.permute.xlu2 %669 }
 0x531   :  { %vm424_vm12 = vmor %vm422_vm11, %vm423_vm10 }
 0x532   :  { %v419_v23 = vsub.f32 1.0, %v418_v22 }
 0x534   :  { %v420_v24 = vmul.f32 %v1049_v21, %v419_v23 }
 0x536   :  { %v421_v26 = vadd.f32 %v1049_v21, %v420_v24 }
 0x538   :  { %v425_v28 = vsel %vm424_vm12, %v1049_v21, %v421_v26  ;;  %v769_v20 = vpop.permute.xlu2 %768 }
 0x539   :  { %v430_v29 = vsel %vm427_vm13, %v429_v27, %v425_v28 }
 0x53a   :  { %v431_v30 = vmul.f32 %v1047_v9, %v430_v29 }
 0x53c   :  { %998 = vmatmul.msk.f32.vlgmr.msrb.gmra.mxu1 %vm211_vm1, %v431_v30 }
 0x540   :  { %v767_v23 = vpop.permute.xlu2 %766 }
 0x546   :  { %v507_v31 = vpop.xlane.xlu0 %506 }
 0x547   :  { %v508_v32 = vsub.f32 %v502_v18, %v507_v31 }
 0x549   :  { %v509_v33 = vmul.f32 1.442695, %v508_v32 }
 0x54b   :  { %1050 = vpow2.f32 %v509_v33 }
 0x551   :  { %v1051_v34 = vpop.eup %1050 }
 0x552   :  { %v511_v35 = vsel %vm211_vm1, %v1051_v34, 0.0 }
 0x553   :  { %512 = vadd.xlane.f32.xlu1 %v511_v35 }
 0x559   :  { %v672_v53 = vpop.permute.xlu0 %671 }
 0x5b9   :  { %v452_v36 = vpop.f32.mrf.mxu1 }
 0x5ba   :  { %470 = vmatpush.msrb.mxu2 %v452_v36 }
 0x5bb   :  { %999 = vmatmul.msk.f32.vlgmr.msrb.gmra.mxu2 %vm211_vm1, %v1302_v10 }
 0x5bc   :  { %1005 = vmatpush.xpose.msk.msra.mxu2 %vm120_vm0, %v1359_v19 }
 0x5c0   :  { %1012 = vmatpush.xpose.msk.msrb.mxu2 %vm211_vm1, %v1302_v10 }
 0x5c3   :  { %1006 = vmatmul.msk.f32.vlgmr.msra.gmra.mxu2 %vm120_vm0, %v183_v16 }
 0x5c6   :  { %v513_v37 = vpop.xlane.xlu1 %512 }
 0x5c7   :  { %1052 = vrcp.f32 %v513_v37  ;;  %v525_v41 = vand.u32 2147483648, %v513_v37  ;;  %v523_v43 = vand.u32 2147483647, %v513_v37  ;;  %vm519_vm15 = vweird.f32 %v513_v37 }
 0x5c9   :  { %v526_v45 = vor.u32 1.1754944e-38, %v525_v41  ;;  %vm524_vm3 = vcmp.eq.f32.partialorder %v523_v43, 8.507059e+37 }
 0x5cd   :  { %v1053_v38 = vpop.eup %1052 }
 0x5ce   :  { %v515_v39 = vmul.f32 %v1053_v38, %v513_v37  ;;  %vm520_vm14 = vweird.f32 %v1053_v38  ;;  %v864_v37 = vpop.permute.xlu2 %863 }
 0x5cf   :  { %vm521_vm2 = vmor %vm519_vm15, %vm520_vm14 }
 0x5d0   :  { %v516_v40 = vsub.f32 1.0, %v515_v39 }
 0x5d2   :  { %v517_v42 = vmul.f32 %v1053_v38, %v516_v40 }
 0x5d4   :  { %v518_v44 = vadd.f32 %v1053_v38, %v517_v42 }
 0x5d6   :  { %v522_v46 = vsel %vm521_vm2, %v1053_v38, %v518_v44 }
 0x5d7   :  { %v527_v47 = vsel %vm524_vm3, %v526_v45, %v522_v46 }
 0x5d8   :  { %v528_v48 = vmul.f32 %v1051_v34, %v527_v47 }
 0x5da   :  { %1003 = vmatmul.msk.f32.vlgmr.msra.gmra.mxu0 %vm211_vm1, %v528_v48 }
 0x63e   :  { %v472_v49 = vpop.f32.mrf.mxu2 }
 0x63f   :  { %476 = vst.msk [vmem:[#allocation11 + $0x10] sm:$0xff] %vm211_vm1, %v472_v49 }
 0x646   :  { %v597_v50 = vpop.f32.mrf.mxu2 }
 0x647   :  { %v600_v51 = vsel %vm211_vm1, %v597_v50, -inf }
 0x648   :  { %601 = vmax.xlane.f32.xlu1 %v600_v51 }
 0x657   :  { %v549_v52 = vpop.f32.mrf.mxu0 }
 0x658   :  { %567 = vmatpush.msra.mxu1 %v549_v52 }
 0x659   :  { %1004 = vmatmul.msk.f32.vlgmr.msra.gmra.mxu1 %vm211_vm1, %v1302_v10 }
 0x65a   :  { %1010 = vmatpush.xpose.msk.msrb.mxu1 %vm120_vm0, %v672_v53 }
 0x65e   :  { %1017 = vmatpush.xpose.msk.msra.mxu1 %vm211_vm1, %v1302_v10 }
 0x661   :  { %1011 = vmatmul.msk.f32.vlgmr.msrb.gmra.mxu1 %vm120_vm0, %v670_v54 }
 0x6bb   :  { %v602_v55 = vpop.xlane.xlu1 %601 }
 0x6bc   :  { %v603_v56 = vsub.f32 %v597_v50, %v602_v55 }
 0x6be   :  { %v604_v57 = vmul.f32 1.442695, %v603_v56 }
 0x6c0   :  { %1054 = vpow2.f32 %v604_v57 }
 0x6c6   :  { %v1055_v58 = vpop.eup %1054 }
 0x6c7   :  { %v606_v59 = vsel %vm211_vm1, %v1055_v58, 0.0 }
 0x6c8   :  { %607 = vadd.xlane.f32.xlu0 %v606_v59 }
 0x6d6   :  { %v569_v60 = vpop.f32.mrf.mxu1 }
 0x6d7   :  { %573 = vst.msk [vmem:[#allocation11 + $0x18] sm:$0xff] %vm211_vm1, %v569_v60 }
 0x6de   :  { %v694_v61 = vpop.f32.mrf.mxu1 }
 0x6df   :  { %v697_v62 = vsel %vm211_vm1, %v694_v61, -inf }
 0x6e0   :  { %698 = vmax.xlane.f32.xlu1 %v697_v62 }
 0x73b   :  { %v608_v63 = vpop.xlane.xlu0 %607 }
 0x73c   :  { %1056 = vrcp.f32 %v608_v63  ;;  %v620_v3 = vand.u32 2147483648, %v608_v63  ;;  %v618_v5 = vand.u32 2147483647, %v608_v63  ;;  %vm614_vm5 = vweird.f32 %v608_v63 }
 0x73e   :  { %v621_v7 = vor.u32 1.1754944e-38, %v620_v3  ;;  %vm619_vm7 = vcmp.eq.f32.partialorder %v618_v5, 8.507059e+37 }
 0x742   :  { %v1057_v0 = vpop.eup %1056 }
 0x743   :  { %v610_v1 = vmul.f32 %v1057_v0, %v608_v63  ;;  %vm615_vm4 = vweird.f32 %v1057_v0 }
 0x744   :  { %vm616_vm6 = vmor %vm614_vm5, %vm615_vm4 }
 0x745   :  { %v611_v2 = vsub.f32 1.0, %v610_v1 }
 0x747   :  { %v612_v4 = vmul.f32 %v1057_v0, %v611_v2 }
 0x749   :  { %v613_v6 = vadd.f32 %v1057_v0, %v612_v4 }
 0x74b   :  { %v617_v8 = vsel %vm616_vm6, %v1057_v0, %v613_v6 }
 0x74c   :  { %v622_v9 = vsel %vm619_vm7, %v621_v7, %v617_v8 }
 0x74d   :  { %v623_v13 = vmul.f32 %v1055_v58, %v622_v9 }
 0x74f   :  { %1008 = vmatmul.msk.f32.vlgmr.msra.gmra.mxu3 %vm211_vm1, %v623_v13 }
 0x753   :  { %v699_v14 = vpop.xlane.xlu1 %698 }
 0x754   :  { %v700_v15 = vsub.f32 %v694_v61, %v699_v14 }
 0x756   :  { %v701_v16 = vmul.f32 1.442695, %v700_v15 }
 0x758   :  { %1058 = vpow2.f32 %v701_v16 }
 0x75e   :  { %v1059_v17 = vpop.eup %1058 }
 0x75f   :  { %v703_v18 = vsel %vm211_vm1, %v1059_v17, 0.0 }
 0x760   :  { %704 = vadd.xlane.f32.xlu1 %v703_v18 }
 0x779   :  { %865 = vrot.lane.b32.xlu1 %v1359_v19, %s1230_s5 }
 0x7d2   :  { %v644_v12 = vpop.f32.mrf.mxu3 }
 0x7d3   :  { %v705_v21 = vpop.xlane.xlu1 %704  ;;  %662 = vmatpush.msrb.mxu0 %v644_v12 }
 0x7d4   :  { %1060 = vrcp.f32 %v705_v21  ;;  %1009 = vmatmul.msk.f32.vlgmr.msrb.gmra.mxu0 %vm211_vm1, %v1302_v10  ;;  %v717_v19 = vand.u32 2147483648, %v705_v21  ;;  %v715_v26 = vand.u32 2147483647, %v705_v21  ;;  %vm711_vm9 = vweird.f32 %v705_v21 }
 0x7d5   :  { %1015 = vmatpush.xpose.msk.msra.mxu0 %vm120_vm0, %v769_v20 }
 0x7d6   :  { %v718_v28 = vor.u32 1.1754944e-38, %v717_v19  ;;  %vm716_vm11 = vcmp.eq.f32.partialorder %v715_v26, 8.507059e+37 }
 0x7d9   :  { %1022 = vmatpush.xpose.msk.msrb.mxu0 %vm211_vm1, %v1302_v10 }
 0x7da   :  { %v1061_v22 = vpop.eup %1060 }
 0x7db   :  { %v707_v11 = vmul.f32 %v1061_v22, %v705_v21  ;;  %vm712_vm8 = vweird.f32 %v1061_v22 }
 0x7dc   :  { %1016 = vmatmul.msk.f32.vlgmr.msra.gmra.mxu0 %vm120_vm0, %v767_v23  ;;  %vm713_vm10 = vmor %vm711_vm9, %vm712_vm8 }
 0x7dd   :  { %v708_v24 = vsub.f32 1.0, %v707_v11 }
 0x7df   :  { %v709_v25 = vmul.f32 %v1061_v22, %v708_v24 }
 0x7e1   :  { %v710_v27 = vadd.f32 %v1061_v22, %v709_v25 }
 0x7e3   :  { %v714_v29 = vsel %vm713_vm10, %v1061_v22, %v710_v27 }
 0x7e4   :  { %v719_v30 = vsel %vm716_vm11, %v718_v28, %v714_v29 }
 0x7e5   :  { %v720_v31 = vmul.f32 %v1059_v17, %v719_v30 }
 0x7e7   :  { %1013 = vmatmul.msk.f32.vlgmr.msrb.gmra.mxu2 %vm211_vm1, %v720_v31 }
 0x7eb   :  { %v866_v36 = vpop.permute.xlu1 %865 }
 0x851   :  { %v664_v32 = vpop.f32.mrf.mxu0 }
 0x852   :  { %668 = vst.msk [vmem:[#allocation11 + $0x20] sm:$0xff] %vm211_vm1, %v664_v32 }
 0x859   :  { %v791_v33 = vpop.f32.mrf.mxu0 }
 0x85a   :  { %v794_v34 = vsel %vm211_vm1, %v791_v33, -inf }
 0x85b   :  { %795 = vmax.xlane.f32.xlu2 %v794_v34 }
 0x86a   :  { %v741_v35 = vpop.f32.mrf.mxu2 }
 0x86b   :  { %759 = vmatpush.msrb.mxu3 %v741_v35 }
 0x86c   :  { %1014 = vmatmul.msk.f32.vlgmr.msrb.gmra.mxu3 %vm211_vm1, %v1302_v10 }
 0x86d   :  { %1020 = vmatpush.xpose.msk.msra.mxu3 %vm120_vm0, %v866_v36 }
 0x874   :  { %1021 = vmatmul.msk.f32.vlgmr.msra.gmra.mxu3 %vm120_vm0, %v864_v37 }
 0x8ce   :  { %v796_v38 = vpop.xlane.xlu2 %795 }
 0x8cf   :  { %v797_v39 = vsub.f32 %v791_v33, %v796_v38 }
 0x8d1   :  { %v798_v40 = vmul.f32 1.442695, %v797_v39 }
 0x8d3   :  { %1062 = vpow2.f32 %v798_v40 }
 0x8d9   :  { %v1063_v41 = vpop.eup %1062 }
 0x8da   :  { %v800_v42 = vsel %vm211_vm1, %v1063_v41, 0.0 }
 0x8db   :  { %801 = vadd.xlane.f32.xlu0 %v800_v42 }
 0x8ef   :  { %v761_v43 = vpop.f32.mrf.mxu3 }
 0x8f0   :  { %765 = vst.msk [vmem:[#allocation11 + $0x28] sm:$0xff] %vm211_vm1, %v761_v43 }
 0x8f7   :  { %v888_v44 = vpop.f32.mrf.mxu3 }
 0x8f8   :  { %v891_v45 = vsel %vm211_vm1, %v888_v44, -inf }
 0x8f9   :  { %892 = vmax.xlane.f32.xlu1 %v891_v45 }
 0x94e   :  { %v802_v46 = vpop.xlane.xlu0 %801 }
 0x94f   :  { %1064 = vrcp.f32 %v802_v46  ;;  %v814_v50 = vand.u32 2147483648, %v802_v46  ;;  %v812_v52 = vand.u32 2147483647, %v802_v46  ;;  %vm808_vm12 = vweird.f32 %v802_v46 }
 0x951   :  { %v815_v54 = vor.u32 1.1754944e-38, %v814_v50  ;;  %vm813_vm14 = vcmp.eq.f32.partialorder %v812_v52, 8.507059e+37 }
 0x955   :  { %v1065_v47 = vpop.eup %1064 }
 0x956   :  { %v804_v48 = vmul.f32 %v1065_v47, %v802_v46  ;;  %vm809_vm0 = vweird.f32 %v1065_v47 }
 0x957   :  { %vm810_vm13 = vmor %vm808_vm12, %vm809_vm0 }
 0x958   :  { %v805_v49 = vsub.f32 1.0, %v804_v48 }
 0x95a   :  { %v806_v51 = vmul.f32 %v1065_v47, %v805_v49 }
 0x95c   :  { %v807_v53 = vadd.f32 %v1065_v47, %v806_v51 }
 0x95e   :  { %v811_v55 = vsel %vm810_vm13, %v1065_v47, %v807_v53 }
 0x95f   :  { %v816_v56 = vsel %vm813_vm14, %v815_v54, %v811_v55 }
 0x960   :  { %v817_v57 = vmul.f32 %v1063_v41, %v816_v56 }
 0x962   :  { %1018 = vmatmul.msk.f32.vlgmr.msra.gmra.mxu1 %vm211_vm1, %v817_v57 }
 0x96c   :  { %v893_v58 = vpop.xlane.xlu1 %892 }
 0x96d   :  { %v894_v59 = vsub.f32 %v888_v44, %v893_v58 }
 0x96f   :  { %v895_v60 = vmul.f32 1.442695, %v894_v59 }
 0x971   :  { %1066 = vpow2.f32 %v895_v60 }
 0x977   :  { %v1067_v61 = vpop.eup %1066 }
 0x978   :  { %v897_v62 = vsel %vm211_vm1, %v1067_v61, 0.0 }
 0x979   :  { %898 = vadd.xlane.f32.xlu0 %v897_v62 }
 0x9df   :  { %v838_v63 = vpop.f32.mrf.mxu1 }
 0x9e0   :  { %856 = vmatpush.msra.mxu2 %v838_v63 }
 0x9e1   :  { %1019 = vmatmul.msk.f32.vlgmr.msra.gmra.mxu2 %vm211_vm1, %v1302_v10 }
 0x9ec   :  { %v899_v0 = vpop.xlane.xlu0 %898 }
 0x9ed   :  { %1068 = vrcp.f32 %v899_v0  ;;  %v911_v4 = vand.u32 2147483648, %v899_v0  ;;  %v909_v6 = vand.u32 2147483647, %v899_v0  ;;  %vm905_vm2 = vweird.f32 %v899_v0 }
 0x9ef   :  { %v912_v8 = vor.u32 1.1754944e-38, %v911_v4  ;;  %vm910_vm4 = vcmp.eq.f32.partialorder %v909_v6, 8.507059e+37 }
 0x9f3   :  { %v1069_v1 = vpop.eup %1068 }
 0x9f4   :  { %v901_v2 = vmul.f32 %v1069_v1, %v899_v0  ;;  %vm906_vm15 = vweird.f32 %v1069_v1 }
 0x9f5   :  { %vm907_vm3 = vmor %vm905_vm2, %vm906_vm15 }
 0x9f6   :  { %v902_v3 = vsub.f32 1.0, %v901_v2 }
 0x9f8   :  { %v903_v5 = vmul.f32 %v1069_v1, %v902_v3 }
 0x9fa   :  { %v904_v7 = vadd.f32 %v1069_v1, %v903_v5 }
 0x9fc   :  { %v908_v9 = vsel %vm907_vm3, %v1069_v1, %v904_v7 }
 0x9fd   :  { %v913_v13 = vsel %vm910_vm4, %v912_v8, %v908_v9 }
 0x9fe   :  { %v914_v14 = vmul.f32 %v1067_v61, %v913_v13 }
 0xa00   :  { %1023 = vmatmul.msk.f32.vlgmr.msrb.gmra.mxu0 %vm211_vm1, %v914_v14 }
 0xa64   :  { %v858_v15 = vpop.f32.mrf.mxu2 }
 0xa65   :  { %862 = vst.msk [vmem:[#allocation11 + $0x30] sm:$0xff] %vm211_vm1, %v858_v15 }
 0xa7d   :  { %v935_v16 = vpop.f32.mrf.mxu0 }
 0xa7e   :  { %953 = vmatpush.msrb.mxu1 %v935_v16 }
 0xa7f   :  { %1024 = vmatmul.msk.f32.vlgmr.msrb.gmra.mxu1 %vm211_vm1, %v1302_v10 }
 0xafc   :  { %v955_v17 = vpop.f32.mrf.mxu1 }
 0xafd   :  { %959 = vst.msk [vmem:[#allocation11 + $0x38] sm:$0xff] %vm211_vm1, %v955_v17 }
 0xafe   :  { %972 = dma.vmem_to_hbm [thread:$0]  %s965_s29, 1024, %s967_s11, [#allocation4], %s1223_s9, %s1223_s9, %s1224_s10  }
 0xaff   :  { %1220 = dma.done.wait [#allocation4], 1024  }
 0xb00   :  { %1221 = vsyncadd [#allocation4], 4294966272 }
 0xb01   :  { %977 = vsyncpa [#allocation3], 1 }
 0xb02   :  { %978 = vsyncpa [#allocation6], 1 }
 0xb03   :  { %979 = vsyncpa [#allocation9], 1 }
 0xb04   :  { %980 = vsyncpa [#allocation4], 1 }

</bundles_post_ra>
